<compile_context>
chip_gen: v6e
topology: v6e:2x2x1
jax: 0.10.0
libtpu: 0.0.40
codegen_flags: <defaults>
</compile_context>

<pallas_src>
import jax
import jax.numpy as jnp
from jax.experimental import pallas as pl
from jax.experimental.pallas import tpu as pltpu

_LANES = 128


def _sublane_multiple(dtype) -> int:
    itemsize = jnp.dtype(dtype).itemsize
    if itemsize == 1:
        return 32
    if itemsize == 2:
        return 16
    return 8


def _tuning() -> tuple[int, int]:
    """Return (block_bytes, vmem_limit_bytes) for the current TPU generation.

    VMEM budget check: in + out, double-buffered => 4 buffers x block.
    """
    kind = ""
    try:
        kind = jax.devices()[0].device_kind.lower()
    except Exception:  # pragma: no cover - defensive; assume conservative chip
        pass
    if "v7" in kind:
        return 8 * 1024 * 1024, 40 << 20   # 32 MiB of buffers, 64 MiB physical VMEM
    if "v6" in kind or "v5p" in kind:
        return 4 * 1024 * 1024, 32 << 20   # 16 MiB of buffers, 128 MiB physical VMEM
    return 2 * 1024 * 1024, 16 << 20       # v5e & unknown: 8 MiB of buffers


def _pick_width(n: int, sub: int) -> int:
    """Largest lane width dividing n whose row count is sublane-aligned."""
    divisors = [c for c in (8192, 4096, 2048, 1024, 512, 256, 128) if n % c == 0]
    for c in divisors:                      # widest first
        if (n // c) % sub == 0:
            return c
    return divisors[-1]                     # most rows -> best vreg occupancy


def _mul_2d(x2d: jax.Array, weight: float) -> jax.Array:
    """Elementwise x2d * weight on a lane-aligned (rows, W) slab."""
    rows, w = x2d.shape
    dtype = x2d.dtype
    itemsize = jnp.dtype(dtype).itemsize
    sub = _sublane_multiple(dtype)
    block_bytes, vmem_limit = _tuning()

    # Block rows: target the per-generation block size, rounded to the dtype
    # sublane packing so every non-edge tile is an unmasked full vreg tile.
    tile_rows = block_bytes // (w * itemsize)
    tile_rows = max(sub, (tile_rows // sub) * sub)
    if tile_rows >= rows:
        tile_rows = rows                    # full-extent dim is always legal
        grid = (1,)
    else:
        grid = (pl.cdiv(rows, tile_rows),)  # Pallas masks the edge block

    def kernel(x_ref, o_ref):
        # `weight` is a compile-time Python scalar closed over by the kernel.
        o_ref[...] = x_ref[...] * weight

    return pl.pallas_call(
        kernel,
        out_shape=jax.ShapeDtypeStruct((rows, w), dtype),
        grid_spec=pltpu.PrefetchScalarGridSpec(
            num_scalar_prefetch=0,
            grid=grid,
            in_specs=[pl.BlockSpec((tile_rows, w), lambda i: (i, 0))],
            out_specs=pl.BlockSpec((tile_rows, w), lambda i: (i, 0)),
        ),
        compiler_params=pltpu.CompilerParams(
            # "parallel" lets v7x shard row-blocks across its 2 TensorCores.
            dimension_semantics=("parallel",),
            vmem_limit_bytes=vmem_limit,
        ),
        cost_estimate=pl.CostEstimate(
            flops=rows * w,
            transcendentals=0,
            bytes_accessed=2 * rows * w * itemsize,
        ),
    )(x2d)


def mul(x: jax.Array, weight: float) -> jax.Array:
    """y = x * weight, matching PyTorch Mul.forward semantics."""
    orig_shape = x.shape
    n = x.size

    # Integer / bool inputs: PyTorch promotes int_tensor * float_scalar to a
    # float tensor.  XLA's weak-typed elementwise reproduces that promotion;
    # the fixed-out-dtype kernel would truncate, so do not use it here.
    if not jnp.issubdtype(x.dtype, jnp.floating):
        return x * weight

    # Ragged sizes: the pad->kernel->slice round trip costs ~3x the ideal HBM
    # traffic (1 read + 1 write); XLA elementwise is already at roofline.
    if n == 0 or n % _LANES != 0:
        return x * weight

    # Fast path: pure reshape (same linear layout -> no HBM copy) to a
    # lane-dense slab with sublane-aligned row count.
    sub = _sublane_multiple(x.dtype)
    w = _pick_width(n, sub)
    out2d = _mul_2d(x.reshape(n // w, w), weight)
    return out2d.reshape(orig_shape)


if __name__ == "__main__":
    key = jax.random.PRNGKey(0)
    weight = 0.5  # static scalar stored by the module in __init__

    # NCHW input, consistent with typical PyTorch conv-pipeline usage.
    x = jax.random.normal(key, (2, 4, 16, 16), dtype=jnp.float32)
    y = jax.block_until_ready(mul(x, weight))
    assert y.shape == x.shape and y.dtype == x.dtype
    assert jnp.allclose(y, x * weight, atol=1e-6, rtol=1e-6)

    # Ragged (non-lane-aligned) size -> XLA elementwise fallback.
    x_odd = jax.random.normal(jax.random.PRNGKey(1), (3, 5, 7), dtype=jnp.float32)
    y_odd = jax.block_until_ready(mul(x_odd, weight))
    assert y_odd.shape == x_odd.shape
    assert jnp.allclose(y_odd, x_odd * weight, atol=1e-6, rtol=1e-6)

    # Integer input -> float output, matching torch's int * float promotion.
    x_int = jnp.arange(2 * 4 * 16 * 16, dtype=jnp.int32).reshape(2, 4, 16, 16)
    y_int = jax.block_until_ready(mul(x_int, weight))
    assert jnp.issubdtype(y_int.dtype, jnp.floating)
    assert jnp.allclose(y_int, x_int.astype(jnp.float32) * weight)

    print("KERNEL_OK")
</pallas_src>

<mosaic_0001>
module attributes {stable_mosaic.version = 11 : i64} {
  func.func @kernel(%arg0: i32, %arg1: memref<8x256xf32, #tpu.memory_space<vmem>>, %arg2: memref<8x256xf32, #tpu.memory_space<vmem>>) attributes {dimension_semantics = [#tpu.dimension_semantics<parallel>], iteration_bounds = array<i64: 1>, scalar_prefetch = 0 : i64, scratch_operands = 0 : i64, tpu.core_type = #tpu.core_type<tc>, window_params = [{transform_indices = @transform_0, window_bounds = array<i64: 8, 256>}, {transform_indices = @transform_1, window_bounds = array<i64: 8, 256>}]} {
    %c0 = arith.constant 0 : index
    %c0_0 = arith.constant 0 : index
    %0 = vector.load %arg1[%c0, %c0_0] : memref<8x256xf32, #tpu.memory_space<vmem>>, vector<8x256xf32>
    %cst = arith.constant 5.000000e-01 : f32
    %1 = vector.broadcast %cst : f32 to vector<8x256xf32>
    %2 = arith.mulf %0, %1 : vector<8x256xf32>
    %c0_1 = arith.constant 0 : index
    %c0_2 = arith.constant 0 : index
    %3 = vector.load %arg2[%c0_1, %c0_2] : memref<8x256xf32, #tpu.memory_space<vmem>>, vector<8x256xf32>
    tpu.vector_store %arg2[%c0_1, %c0_2], %2 {strides = array<i32>} : memref<8x256xf32, #tpu.memory_space<vmem>>, vector<8x256xf32>,
    return
  }
  func.func @transform_0(%arg0: i32) -> (i32, i32) {
    %c0_i32 = arith.constant 0 : i32
    %c0_i32_0 = arith.constant 0 : i32
    return %arg0, %c0_i32 : i32, i32
  }
  func.func @transform_1(%arg0: i32) -> (i32, i32) {
    %c0_i32 = arith.constant 0 : i32
    %c0_i32_0 = arith.constant 0 : i32
    return %arg0, %c0_i32 : i32, i32
  }
}

</mosaic_0001>

<bundles_post_ra>
// kernel: tpu_custom_call.1
= control target key start
LH: loop header
LB: loop body
LE: loop exit
PB: predicated region body
PF: predicated region fallthrough
CT: control target
= control target key end

     0   :  { %6 = vsyncpa [#allocation3], 0  ;;  %s106_s0 = inlined_call_operand.hbm [shape: f32[8,256], index: 0, kind: input, shape index: {}]   ;;  %s107_s1 = inlined_call_operand.hbm [shape: f32[8,256], index: 1, kind: output, shape index: {}]  }
   0x1   :  { %7 = vsyncpa [#allocation4], 0  ;;  %s88_s6 = smov [#allocation2]  }
   0x2   :  { %s14_s7 = sshll.u32 %s88_s6, 4  ;;  %s15_s7 = int_to_ptr.vmem [resolvable:$true] %s14_s7 }
   0x3   :  { %s52_s8 = scalar_lea.vmem %s15_s7, 256  ;;  %p57_p1 = scmp.lt.s32.totalorder %s15_s7, %s15_s7 }
   0x4   :  { %p53_p0 = scmp.ne.s32.totalorder %s15_s7, %s52_s8  ;;  %p58_p2 = scmp.lt.s32.totalorder %s52_s8, %s52_s8 }
   0x6   :  { %p59_p3 = por %p58_p2, %p57_p1 }
   0x8   :  { %p60_p4 = pnand %p59_p3, %p53_p0 }
   0xa   :  { %63 = shalt.err (!%p60_p4)
}
   0xb   :  { %17 = dma.hbm_to_vmem [thread:$0]  %s106_s0, 256, %s15_s7, [#allocation3]  }
   0xc   :  { %84 = dma.done.wait [#allocation3], 256  }
   0xd   :  { %85 = vsyncadd [#allocation3], 4294967040  ;;  %s89_s11 = smov [#allocation5]   ;;  %v21_v0 = vld [vmem:[#allocation2] sm:$0xff]  ;;  %v22_v1 = vld [vmem:[#allocation2 + $0x8] sm:$0xff] }
   0xe   :  { %s33_s12 = sshll.u32 %s89_s11, 4  ;;  %v23_v2 = vmul.f32 0.5, %v21_v0  ;;  %v24_v3 = vmul.f32 0.5, %v22_v1  ;;  %s34_s12 = int_to_ptr.vmem [resolvable:$true] %s33_s12 }
   0xf   :  { %s64_s13 = scalar_lea.vmem %s34_s12, 256  ;;  %p69_p6 = scmp.lt.s32.totalorder %s34_s12, %s34_s12 }
  0x10   :  { %25 = vst [vmem:[#allocation5] sm:$0xff] %v23_v2  ;;  %26 = vst [vmem:[#allocation5 + $0x8] sm:$0xff] %v24_v3  ;;  %p65_p5 = scmp.ne.s32.totalorder %s34_s12, %s64_s13  ;;  %p70_p7 = scmp.lt.s32.totalorder %s64_s13, %s64_s13 }
  0x12   :  { %p71_p8 = por %p70_p7, %p69_p6 }
  0x14   :  { %p72_p9 = pnand %p71_p8, %p65_p5 }
  0x16   :  { %75 = shalt.err (!%p72_p9)
}
  0x17   :  { %36 = dma.vmem_to_hbm [thread:$0]  %s34_s12, 256, %s107_s1, [#allocation4]  }
  0x18   :  { %86 = dma.done.wait [#allocation4], 256  }
  0x19   :  { %87 = vsyncadd [#allocation4], 4294967040 }
  0x1a   :  { %40 = vsyncpa [#allocation3], 1 }
  0x1b   :  { %41 = vsyncpa [#allocation4], 1 }

</bundles_post_ra>
